<compile_context>
chip_gen: v5e
topology: v5e:2x2
jax: 0.10.0
libtpu: 0.0.40
codegen_flags: <defaults>
</compile_context>

<pallas_src>
import jax
import jax.numpy as jnp
from jax.experimental import pallas as pl
from jax.experimental.pallas import tpu as pltpu


H1 = 300        # first Linear width
H2 = 200        # second Linear width (module output features)
H2_PAD = 256    # lane-dense padded output width (multiple of 128)


def _round_up(a, m):
    return (a + m - 1) // m * m


def _mlp_kernel(xp_ref, xf_ref, w1p_ref, w1f_ref, b1_ref, w2_ref, b2_ref, o_ref):
    # xp_ref:  (TM, E_pre)    token tile, pretrained embedding part
    # xf_ref:  (TM, E_flag)   token tile, flag embedding part
    # w1p_ref: (E_pre, H1)    W1[:E_pre]   (resident, constant index_map)
    # w1f_ref: (E_flag, H1)   W1[E_pre:]
    # b1_ref:  (1, H1)        f32
    # w2_ref:  (H1, H2_PAD)   zero-padded columns beyond 200
    # b2_ref:  (1, H2_PAD)    f32, zero-padded
    # o_ref:   (TM, H2_PAD)   f32
    h = (
        jnp.dot(xp_ref[...], w1p_ref[...], preferred_element_type=jnp.float32)
        + jnp.dot(xf_ref[...], w1f_ref[...], preferred_element_type=jnp.float32)
        + b1_ref[...]
    )
    h = jnp.maximum(h, 0.0)
    h = h.astype(w2_ref.dtype)  # bf16 second matmul when compute dtype is bf16
    y = jnp.dot(h, w2_ref[...], preferred_element_type=jnp.float32) + b2_ref[...]
    y = jnp.maximum(y, 0.0)
    o_ref[...] = y.astype(o_ref.dtype)


def sr_compressor_mlp(xp, xf, params, *, compute_dtype=jnp.float32, tile_m=512):
    """Fused [concat -> Linear(300) -> ReLU -> Linear(200) -> ReLU] over tokens.

    xp: (N, E_pre) float32 tokens (pretrained embedding part)
    xf: (N, E_flag) float32 tokens (flag embedding part)
    returns: (N, 200) float32
    """
    n, e_pre = xp.shape
    e_flag = xf.shape[1]
    h1 = params["b1"].shape[1]
    h2_pad = params["w2"].shape[1]
    h2 = params["out_features"]

    # Sublane alignment: 8 rows for f32, 16 for bf16 (packed sublanes).
    row_align = 8 if jnp.dtype(compute_dtype).itemsize == 4 else 16
    tm = min(tile_m, _round_up(n, row_align))
    tm = _round_up(tm, row_align)
    n_pad = _round_up(n, tm)

    xp_c = xp.astype(compute_dtype)
    xf_c = xf.astype(compute_dtype)
    if n_pad != n:
        xp_c = jnp.pad(xp_c, ((0, n_pad - n), (0, 0)))
        xf_c = jnp.pad(xf_c, ((0, n_pad - n), (0, 0)))

    w1p = params["w1_pre"].astype(compute_dtype)
    w1f = params["w1_flag"].astype(compute_dtype)
    w2 = params["w2"].astype(compute_dtype)
    b1 = params["b1"].astype(jnp.float32)
    b2 = params["b2"].astype(jnp.float32)

    itemsize = jnp.dtype(compute_dtype).itemsize
    flops = int(2 * n_pad * (e_pre * h1 + e_flag * h1 + h1 * h2_pad))
    bytes_accessed = int(
        n_pad * (e_pre + e_flag) * itemsize        # activation tiles in
        + (e_pre + e_flag) * h1 * itemsize         # W1 (split)
        + h1 * h2_pad * itemsize                   # W2 (padded)
        + (h1 + h2_pad) * 4                        # biases (f32)
        + n_pad * h2_pad * 4                       # output (f32)
    )
    cost = pl.CostEstimate(flops=flops, transcendentals=0, bytes_accessed=bytes_accessed)

    grid = (n_pad // tm,)
    out = pl.pallas_call(
        _mlp_kernel,
        out_shape=jax.ShapeDtypeStruct((n_pad, h2_pad), jnp.float32),
        grid_spec=pltpu.PrefetchScalarGridSpec(
            num_scalar_prefetch=0,
            grid=grid,
            in_specs=[
                pl.BlockSpec((tm, e_pre), lambda i: (i, 0)),    # pretrained token tile
                pl.BlockSpec((tm, e_flag), lambda i: (i, 0)),   # flag token tile
                pl.BlockSpec((e_pre, h1), lambda i: (0, 0)),    # W1[:E_pre]
                pl.BlockSpec((e_flag, h1), lambda i: (0, 0)),   # W1[E_pre:]
                pl.BlockSpec((1, h1), lambda i: (0, 0)),        # b1
                pl.BlockSpec((h1, h2_pad), lambda i: (0, 0)),   # W2 (lane-padded)
                pl.BlockSpec((1, h2_pad), lambda i: (0, 0)),    # b2
            ],
            out_specs=pl.BlockSpec((tm, h2_pad), lambda i: (i, 0)),
        ),
        compiler_params=pltpu.CompilerParams(
            dimension_semantics=("parallel",),
        ),
        cost_estimate=cost,
    )(xp_c, xf_c, w1p, w1f, b1, w2, b2)

    # Drop token padding and the zero-padded output lanes.
    return out[:n, :h2]


def sr_compressor_forward(pretrained_emb, word_id_emb, params, seq_len=None, para=False,
                          *, compute_dtype=jnp.float32, tile_m=512):
    """Full SR_Compressor.forward (eval-mode dropout = identity). `seq_len` unused,
    matching the PyTorch module."""
    del seq_len, para  # TODO(synk): training-mode dropout (p=0.3) not implemented.
    b, s, _ = pretrained_emb.shape
    xp = pretrained_emb.reshape(b * s, -1)
    xf = word_id_emb.reshape(b * s, -1)
    y = sr_compressor_mlp(xp, xf, params, compute_dtype=compute_dtype, tile_m=tile_m)
    return y.reshape(b, s, -1)


def init_params(key, pretrain_emb_size, flag_emb_size):
    """nn.Linear-shaped params, stored transposed (in, out); W1 pre-split for the fused
    concat, W2/b2 zero-padded from 200 -> 256 output lanes."""
    d_in = pretrain_emb_size + flag_emb_size
    k1, k2, k3, k4 = jax.random.split(key, 4)
    w1 = jax.random.normal(k1, (d_in, H1), jnp.float32) * 0.05
    b1 = jax.random.normal(k2, (1, H1), jnp.float32) * 0.05
    w2 = jax.random.normal(k3, (H1, H2), jnp.float32) * 0.05
    b2 = jax.random.normal(k4, (1, H2), jnp.float32) * 0.05
    return {
        "w1_pre": w1[:pretrain_emb_size],
        "w1_flag": w1[pretrain_emb_size:],
        "b1": b1,
        "w2": jnp.pad(w2, ((0, 0), (0, H2_PAD - H2))),
        "b2": jnp.pad(b2, ((0, 0), (0, H2_PAD - H2))),
        "out_features": H2,
    }


if __name__ == "__main__":
    # small shapes consistent with the module
    batch = 2
    seq = 8
    pretrain_emb_size = 32
    flag_emb_size = 16

    key = jax.random.PRNGKey(0)
    kp, kw, kparam = jax.random.split(key, 3)
    pretrained_emb = jax.random.normal(kp, (batch, seq, pretrain_emb_size), jnp.float32)
    word_id_emb = jax.random.normal(kw, (batch, seq, flag_emb_size), jnp.float32)
    params = init_params(kparam, pretrain_emb_size, flag_emb_size)

    # f32 path (default)
    out = sr_compressor_forward(pretrained_emb, word_id_emb, params, seq_len=None)
    out = jax.block_until_ready(out)

    # pure-JAX reference (un-split, un-padded weights)
    w1_full = jnp.concatenate([params["w1_pre"], params["w1_flag"]], axis=0)
    w2_full = params["w2"][:, :H2]
    b2_full = params["b2"][:, :H2]
    x = jnp.concatenate([pretrained_emb, word_id_emb], axis=2).reshape(batch * seq, -1)
    ref = jnp.maximum(x @ w1_full + params["b1"], 0.0)
    ref = jnp.maximum(ref @ w2_full + b2_full, 0.0)
    ref = ref.reshape(batch, seq, H2)

    assert out.shape == (batch, seq, H2)
    assert jnp.allclose(out, ref, atol=1e-4, rtol=1e-4)

    # bf16 compute path (f32 accumulation) — looser tolerance
    out_bf16 = sr_compressor_forward(
        pretrained_emb, word_id_emb, params, compute_dtype=jnp.bfloat16
    )
    out_bf16 = jax.block_until_ready(out_bf16)
    assert out_bf16.shape == (batch, seq, H2)
    assert jnp.allclose(out_bf16, ref, atol=5e-2, rtol=5e-2)

    print("KERNEL_OK")
</pallas_src>

<mosaic_0001>
module attributes {stable_mosaic.version = 11 : i64} {
  func.func @_mlp_kernel(%arg0: i32, %arg1: memref<16x32xf32, #tpu.memory_space<vmem>>, %arg2: memref<16x16xf32, #tpu.memory_space<vmem>>, %arg3: memref<32x300xf32, #tpu.memory_space<vmem>>, %arg4: memref<16x300xf32, #tpu.memory_space<vmem>>, %arg5: memref<1x300xf32, #tpu.memory_space<vmem>>, %arg6: memref<300x256xf32, #tpu.memory_space<vmem>>, %arg7: memref<1x256xf32, #tpu.memory_space<vmem>>, %arg8: memref<16x256xf32, #tpu.memory_space<vmem>>) attributes {dimension_semantics = [#tpu.dimension_semantics<parallel>], iteration_bounds = array<i64: 1>, scalar_prefetch = 0 : i64, scratch_operands = 0 : i64, tpu.core_type = #tpu.core_type<tc>, window_params = [{transform_indices = @transform_0, window_bounds = array<i64: 16, 32>}, {transform_indices = @transform_1, window_bounds = array<i64: 16, 16>}, {pipeline_mode = #tpu.pipeline_mode<synchronous>, transform_indices = @transform_2, window_bounds = array<i64: 32, 300>}, {pipeline_mode = #tpu.pipeline_mode<synchronous>, transform_indices = @transform_3, window_bounds = array<i64: 16, 300>}, {pipeline_mode = #tpu.pipeline_mode<synchronous>, transform_indices = @transform_4, window_bounds = array<i64: 1, 300>}, {pipeline_mode = #tpu.pipeline_mode<synchronous>, transform_indices = @transform_5, window_bounds = array<i64: 300, 256>}, {pipeline_mode = #tpu.pipeline_mode<synchronous>, transform_indices = @transform_6, window_bounds = array<i64: 1, 256>}, {transform_indices = @transform_7, window_bounds = array<i64: 16, 256>}]} {
    %c0 = arith.constant 0 : index
    %c0_0 = arith.constant 0 : index
    %0 = vector.load %arg1[%c0, %c0_0] : memref<16x32xf32, #tpu.memory_space<vmem>>, vector<16x32xf32>
    %c0_1 = arith.constant 0 : index
    %c0_2 = arith.constant 0 : index
    %1 = vector.load %arg3[%c0_1, %c0_2] : memref<32x300xf32, #tpu.memory_space<vmem>>, vector<32x300xf32>
    %cst = arith.constant dense<0.000000e+00> : vector<16x300xf32>
    %2 = tpu.matmul %0, %1, %cst {dimension_numbers = #tpu.dot_dimension_numbers<[1], [0], [0], [1], [0, 0, 1, 1], [], []>} : vector<16x32xf32>, vector<32x300xf32>, vector<16x300xf32> -> vector<16x300xf32>
    %c0_3 = arith.constant 0 : index
    %c0_4 = arith.constant 0 : index
    %3 = vector.load %arg2[%c0_3, %c0_4] : memref<16x16xf32, #tpu.memory_space<vmem>>, vector<16x16xf32>
    %c0_5 = arith.constant 0 : index
    %c0_6 = arith.constant 0 : index
    %4 = vector.load %arg4[%c0_5, %c0_6] : memref<16x300xf32, #tpu.memory_space<vmem>>, vector<16x300xf32>
    %cst_7 = arith.constant dense<0.000000e+00> : vector<16x300xf32>
    %5 = tpu.matmul %3, %4, %cst_7 {dimension_numbers = #tpu.dot_dimension_numbers<[1], [0], [0], [1], [0, 0, 1, 1], [], []>} : vector<16x16xf32>, vector<16x300xf32>, vector<16x300xf32> -> vector<16x300xf32>
    %6 = arith.addf %2, %5 : vector<16x300xf32>
    %c0_8 = arith.constant 0 : index
    %c0_9 = arith.constant 0 : index
    %7 = vector.load %arg5[%c0_8, %c0_9] : memref<1x300xf32, #tpu.memory_space<vmem>>, vector<1x300xf32>
    %8 = vector.broadcast %7 : vector<1x300xf32> to vector<16x300xf32>
    %9 = arith.addf %6, %8 : vector<16x300xf32>
    %cst_10 = arith.constant 0.000000e+00 : f32
    %10 = vector.broadcast %cst_10 : f32 to vector<16x300xf32>
    %11 = arith.maximumf %9, %10 : vector<16x300xf32>
    %c0_11 = arith.constant 0 : index
    %c0_12 = arith.constant 0 : index
    %12 = vector.load %arg6[%c0_11, %c0_12] : memref<300x256xf32, #tpu.memory_space<vmem>>, vector<300x256xf32>
    %cst_13 = arith.constant dense<0.000000e+00> : vector<16x256xf32>
    %13 = tpu.matmul %11, %12, %cst_13 {dimension_numbers = #tpu.dot_dimension_numbers<[1], [0], [0], [1], [0, 0, 1, 1], [], []>} : vector<16x300xf32>, vector<300x256xf32>, vector<16x256xf32> -> vector<16x256xf32>
    %c0_14 = arith.constant 0 : index
    %c0_15 = arith.constant 0 : index
    %14 = vector.load %arg7[%c0_14, %c0_15] : memref<1x256xf32, #tpu.memory_space<vmem>>, vector<1x256xf32>
    %15 = vector.broadcast %14 : vector<1x256xf32> to vector<16x256xf32>
    %16 = arith.addf %13, %15 : vector<16x256xf32>
    %cst_16 = arith.constant 0.000000e+00 : f32
    %17 = vector.broadcast %cst_16 : f32 to vector<16x256xf32>
    %18 = arith.maximumf %16, %17 : vector<16x256xf32>
    %c0_17 = arith.constant 0 : index
    %c0_18 = arith.constant 0 : index
    %19 = vector.load %arg8[%c0_17, %c0_18] : memref<16x256xf32, #tpu.memory_space<vmem>>, vector<16x256xf32>
    tpu.vector_store %arg8[%c0_17, %c0_18], %18 {strides = array<i32>} : memref<16x256xf32, #tpu.memory_space<vmem>>, vector<16x256xf32>,
    return
  }
  func.func @transform_0(%arg0: i32) -> (i32, i32) {
    %c0_i32 = arith.constant 0 : i32
    %c0_i32_0 = arith.constant 0 : i32
    return %arg0, %c0_i32 : i32, i32
  }
  func.func @transform_1(%arg0: i32) -> (i32, i32) {
    %c0_i32 = arith.constant 0 : i32
    %c0_i32_0 = arith.constant 0 : i32
    return %arg0, %c0_i32 : i32, i32
  }
  func.func @transform_2(%arg0: i32) -> (i32, i32) {
    %c0_i32 = arith.constant 0 : i32
    %c0_i32_0 = arith.constant 0 : i32
    %c0_i32_1 = arith.constant 0 : i32
    return %c0_i32, %c0_i32_0 : i32, i32
  }
  func.func @transform_3(%arg0: i32) -> (i32, i32) {
    %c0_i32 = arith.constant 0 : i32
    %c0_i32_0 = arith.constant 0 : i32
    %c0_i32_1 = arith.constant 0 : i32
    return %c0_i32, %c0_i32_0 : i32, i32
  }
  func.func @transform_4(%arg0: i32) -> (i32, i32) {
    %c0_i32 = arith.constant 0 : i32
    %c0_i32_0 = arith.constant 0 : i32
    %c0_i32_1 = arith.constant 0 : i32
    return %c0_i32, %c0_i32_0 : i32, i32
  }
  func.func @transform_5(%arg0: i32) -> (i32, i32) {
    %c0_i32 = arith.constant 0 : i32
    %c0_i32_0 = arith.constant 0 : i32
    %c0_i32_1 = arith.constant 0 : i32
    return %c0_i32, %c0_i32_0 : i32, i32
  }
  func.func @transform_6(%arg0: i32) -> (i32, i32) {
    %c0_i32 = arith.constant 0 : i32
    %c0_i32_0 = arith.constant 0 : i32
    %c0_i32_1 = arith.constant 0 : i32
    return %c0_i32, %c0_i32_0 : i32, i32
  }
  func.func @transform_7(%arg0: i32) -> (i32, i32) {
    %c0_i32 = arith.constant 0 : i32
    %c0_i32_0 = arith.constant 0 : i32
    return %arg0, %c0_i32 : i32, i32
  }
}

</mosaic_0001>

<bundles_post_ra>
// kernel: tpu_custom_call.1
= control target key start
LH: loop header
LB: loop body
LE: loop exit
PB: predicated region body
PF: predicated region fallthrough
CT: control target
= control target key end

     0   :  { %12 = vsyncpa [#allocation3], 0  ;;  %s844_s0 = inlined_call_operand.hbm [shape: f32[16,32], index: 0, kind: input, shape index: {}]   ;;  %s845_s1 = inlined_call_operand.hbm [shape: f32[16,16], index: 1, kind: input, shape index: {}]   ;;  %s846_s2 = inlined_call_operand.hbm [shape: f32[32,300], index: 2, kind: input, shape index: {}]   ;;  %s847_s3 = inlined_call_operand.hbm [shape: f32[16,300], index: 3, kind: input, shape index: {}]   ;;  %s848_s4 = inlined_call_operand.vmem [shape: f32[1,300], index: 4, kind: input, shape index: {}]   ;;  %s849_s5 = inlined_call_operand.hbm [shape: f32[300,256], index: 5, kind: input, shape index: {}]   ;;  %s850_s6 = inlined_call_operand.vmem [shape: f32[1,256], index: 6, kind: input, shape index: {}]   ;;  %s851_s7 = inlined_call_operand.hbm [shape: f32[16,256], index: 7, kind: output, shape index: {}]  }
   0x1   :  { %13 = vsyncpa [#allocation6], 0 }
   0x2   :  { %14 = vsyncpa [#allocation9], 0 }
   0x3   :  { %15 = vsyncpa [#allocation4], 0  ;;  %s33_s26 = sshll.u32 %s845_s1, 4  ;;  %s744_s27 = smov [#allocation5]   ;;  %s34_s26 = int_to_ptr.hbm [resolvable:$true] %s33_s26 }
   0x4   :  { %s35_s28 = sshll.u32 %s744_s27, 4  ;;  %s745_s29 = smov 128   ;;  %s36_s28 = int_to_ptr.vmem [resolvable:$true] %s35_s28 }
   0x5   :  { %s746_s30 = smov 8   ;;  %s59_s10 = sshll.u32 %s847_s3, 4  ;;  %s60_s10 = int_to_ptr.hbm [resolvable:$true] %s59_s10 }
   0x6   :  { %41 = dma.hbm_to_vmem [thread:$0]  %s34_s26, 256, %s36_s28, [#allocation6], %s745_s29, %s745_s29, %s746_s30  }
   0x7   :  { %s747_s11 = smov [#allocation8]   ;;  %s20_s15 = sshll.u32 %s844_s0, 4  ;;  %s21_s15 = int_to_ptr.hbm [resolvable:$true] %s20_s15 }
   0x8   :  { %s61_s12 = sshll.u32 %s747_s11, 4  ;;  %s748_s1 = smov 384   ;;  %s62_s12 = int_to_ptr.vmem [resolvable:$true] %s61_s12 }
   0x9   :  { %s749_s16 = smov 24   ;;  %s46_s19 = sshll.u32 %s846_s2, 4  ;;  %s47_s19 = int_to_ptr.hbm [resolvable:$true] %s46_s19 }
   0xa   :  { %67 = dma.hbm_to_vmem [thread:$0]  %s60_s10, 768, %s62_s12, [#allocation9], %s748_s1, %s748_s1, %s749_s16  }
   0xb   :  { %s750_s20 = smov [#allocation2]   ;;  %s751_s3 = smov [#allocation7]  }
   0xc   :  { %s22_s21 = sshll.u32 %s750_s20, 4  ;;  %s48_s22 = sshll.u32 %s751_s3, 4  ;;  %s23_s21 = int_to_ptr.vmem [resolvable:$true] %s22_s21  ;;  %s49_s22 = int_to_ptr.vmem [resolvable:$true] %s48_s22 }
   0xd   :  { %28 = dma.hbm_to_vmem [thread:$0]  %s21_s15, 256, %s23_s21, [#allocation3], %s745_s29, %s745_s29, %s746_s30  }
   0xe   :  { %s74_s0 = sshll.u32 %s849_s5, 4  ;;  %s752_s25 = smov [#allocation10]   ;;  %s75_s0 = int_to_ptr.hbm [resolvable:$true] %s74_s0 }
   0xf   :  { %54 = dma.hbm_to_vmem [thread:$0]  %s47_s19, 1536, %s49_s22, [#allocation6], %s748_s1, %s748_s1, %s749_s16  }
  0x10   :  { %s76_s26 = sshll.u32 %s752_s25, 4  ;;  %s753_s27 = smov 256   ;;  %s77_s26 = int_to_ptr.vmem [resolvable:$true] %s76_s26 }
  0x11   :  { %s754_s28 = smov 16  }
  0x12   :  { %82 = dma.hbm_to_vmem [thread:$0]  %s75_s0, 9728, %s77_s26, [#allocation9], %s753_s27, %s753_s27, %s754_s28  }
  0x13   :  { %736 = dma.done.wait [#allocation3], 256  }
  0x14   :  { %737 = vsyncadd [#allocation3], 4294967040 }
  0x15   :  { %738 = dma.done.wait [#allocation6], 1792  }
  0x16   :  { %739 = vsyncadd [#allocation6], 4294965504 }
  0x17   :  { %740 = dma.done.wait [#allocation9], 10496  }
  0x18   :  { %741 = vsyncadd [#allocation9], 4294956800  ;;  %v124_v0 = vld [vmem:[#allocation8 + $0x18] sm:$0xff]  ;;  %v125_v1 = vld [vmem:[#allocation8 + $0x20] sm:$0xff]  ;;  %vm127_vm0 = vcmask 130048   ;;  %vm203_vm1 = vcmask 261120  }
  0x19   :  { %v121_v2 = vld [vmem:[#allocation8] sm:$0xff]  ;;  %148 = vmatpush.msra.mxu3 %v124_v0  ;;  %171 = vmatpush.msra.mxu1 %v125_v1  ;;  %v122_v3 = vld [vmem:[#allocation8 + $0x8] sm:$0xff]  ;;  %v119_v4 = vld [vmem:[#allocation5] sm:$0xff]  ;;  %vm388_vm2 = vcmask 1043456   ;;  %vm381_vm3 = vcmask 359424   ;;  %s547_s10 = sshll.u32 %s851_s7, 4  ;;  %s548_s10 = int_to_ptr.hbm [resolvable:$true] %s547_s10 }
  0x1a   :  { %v116_v5 = vld [vmem:[#allocation7 + $0x48] sm:$0xff]  ;;  %v117_v6 = vld [vmem:[#allocation7 + $0x50] sm:$0xff]  ;;  %v114_v9 = vld [vmem:[#allocation7 + $0x38] sm:$0xff] }
  0x1b   :  { %149 = vmatpush.msra.mxu3 %v121_v2  ;;  %172 = vmatpush.msra.mxu1 %v122_v3  ;;  %v126_v7 = vld [vmem:[#allocation8 + $0x28] sm:$0xff]  ;;  %v113_v8 = vld [vmem:[#allocation7 + $0x30] sm:$0xff]  ;;  %v118_v11 = vld [vmem:[#allocation7 + $0x58] sm:$0xff] }
  0x1c   :  { %562 = vmatmul.msk.f32.vlgmr.msra.gmra.mxu3 %vm127_vm0, %v119_v4  ;;  %564 = vmatmul.msk.f32.vlgmr.msra.gmra.mxu1 %vm127_vm0, %v119_v4  ;;  %v123_v10 = vld [vmem:[#allocation8 + $0x10] sm:$0xff]  ;;  %v115_v12 = vld [vmem:[#allocation7 + $0x40] sm:$0xff]  ;;  %v110_v14 = vld [vmem:[#allocation7 + $0x18] sm:$0xff] }
  0x1d   :  { %222 = vmatpush.msrb.mxu3 %v116_v5  ;;  %245 = vmatpush.msra.mxu0 %v117_v6  ;;  %v111_v13 = vld [vmem:[#allocation7 + $0x20] sm:$0xff]  ;;  %v112_v15 = vld [vmem:[#allocation7 + $0x28] sm:$0xff]  ;;  %v120_v18 = vld [vmem:[#allocation5 + $0x8] sm:$0xff] }
  0x1e   :  { %194 = vmatpush.msra.mxu2 %v126_v7  ;;  %268 = vmatpush.msrb.mxu1 %v118_v11  ;;  %v108_v16 = vld [vmem:[#allocation7 + $0x8] sm:$0xff]  ;;  %v107_v17 = vld [vmem:[#allocation7] sm:$0xff]  ;;  %v109_v20 = vld [vmem:[#allocation7 + $0x10] sm:$0xff] }
  0x1f   :  { %223 = vmatpush.msrb.mxu3 %v113_v8  ;;  %246 = vmatpush.msra.mxu0 %v114_v9  ;;  %v105_v19 = vld [vmem:[#allocation2] sm:$0xff]  ;;  %v330_v24 = vld [vmem:[#allocation10 + $0xf8] sm:$0xff]  ;;  %v359_v25 = vld [vmem:[#allocation10 + $0x1e0] sm:$0xff] }
  0x20   :  { %195 = vmatpush.msra.mxu2 %v123_v10  ;;  %269 = vmatpush.msrb.mxu1 %v115_v12  ;;  %v361_v21 = vld [vmem:[#allocation10 + $0x1f0] sm:$0xff]  ;;  %v371_v26 = vld [vmem:[#allocation10 + $0x240] sm:$0xff]  ;;  %v106_v28 = vld [vmem:[#allocation2 + $0x8] sm:$0xff] }
  0x21   :  { %247 = vmatpush.msra.mxu0 %v111_v13  ;;  %224 = vmatpush.msrb.mxu3 %v110_v14  ;;  %v373_v22 = vld [vmem:[#allocation10 + $0x250] sm:$0xf]  ;;  %v355_v29 = vld [vmem:[#allocation10 + $0x1c0] sm:$0xff]  ;;  %v328_v35 = vld [vmem:[#allocation10 + $0xe8] sm:$0xff] }
  0x22   :  { %566 = vmatmul.msk.f32.vlgmr.msra.gmra.mxu2 %vm127_vm0, %v119_v4  ;;  %270 = vmatpush.msrb.mxu1 %v112_v15  ;;  %v329_v23 = vld [vmem:[#allocation10 + $0xf0] sm:$0xff]  ;;  %v351_v31 = vld [vmem:[#allocation10 + $0x1a0] sm:$0xff]  ;;  %v326_v39 = vld [vmem:[#allocation10 + $0xd8] sm:$0xff] }
  0x23   :  { %248 = vmatpush.msra.mxu0 %v108_v16  ;;  %225 = vmatpush.msrb.mxu3 %v107_v17  ;;  %v357_v27 = vld [vmem:[#allocation10 + $0x1d0] sm:$0xff]  ;;  %v327_v33 = vld [vmem:[#allocation10 + $0xe0] sm:$0xff]  ;;  %v324_v43 = vld [vmem:[#allocation10 + $0xc8] sm:$0xff] }
  0x24   :  { %563 = vmatmul.msk.f32.gmra.mxu3 %vm127_vm0, %v120_v18  ;;  %565 = vmatmul.msk.f32.gmra.mxu1 %vm127_vm0, %v120_v18  ;;  %v353_v30 = vld [vmem:[#allocation10 + $0x1b0] sm:$0xff]  ;;  %v347_v34 = vld [vmem:[#allocation10 + $0x180] sm:$0xff]  ;;  %v322_v47 = vld [vmem:[#allocation10 + $0xb8] sm:$0xff] }
  0x25   :  { %570 = vmatmul.msk.f32.vlgmr.msra.gmra.mxu0 %vm203_vm1, %v105_v19  ;;  %271 = vmatpush.msrb.mxu1 %v109_v20  ;;  %v349_v32 = vld [vmem:[#allocation10 + $0x190] sm:$0xff]  ;;  %v367_v40 = vld [vmem:[#allocation10 + $0x220] sm:$0xff]  ;;  %v320_v51 = vld [vmem:[#allocation10 + $0xa8] sm:$0xff] }
  0x26   :  { %418 = vmatpush.msra.mxu3 %v361_v21  ;;  %574 = vmatpush.msk.msrb.mxu0 %vm388_vm2, %v373_v22  ;;  %v369_v36 = vld [vmem:[#allocation10 + $0x230] sm:$0xff]  ;;  %v323_v41 = vld [vmem:[#allocation10 + $0xc0] sm:$0xff]  ;;  %v362_v52 = vld [vmem:[#allocation10 + $0x1f8] sm:$0xff] }
  0x27   :  { %395 = vmatpush.msrb.mxu2 %v329_v23  ;;  %464 = vmatpush.msra.mxu1 %v330_v24  ;;  %v325_v37 = vld [vmem:[#allocation10 + $0xd0] sm:$0xff]  ;;  %v343_v42 = vld [vmem:[#allocation10 + $0x160] sm:$0xff]  ;;  %v318_v55 = vld [vmem:[#allocation10 + $0x98] sm:$0xff] }
  0x28   :  { %419 = vmatpush.msra.mxu3 %v359_v25  ;;  %452 = vmatpush.msrb.mxu0 %v371_v26  ;;  %v345_v38 = vld [vmem:[#allocation10 + $0x170] sm:$0xff]  ;;  %v363_v48 = vld [vmem:[#allocation10 + $0x200] sm:$0xff]  ;;  %v360_v56 = vld [vmem:[#allocation10 + $0x1e8] sm:$0xff] }
  0x29   :  { %396 = vmatpush.msrb.mxu2 %v327_v33  ;;  %465 = vmatpush.msra.mxu1 %v328_v35  ;;  %v365_v44 = vld [vmem:[#allocation10 + $0x210] sm:$0xff]  ;;  %v319_v49 = vld [vmem:[#allocation10 + $0xa0] sm:$0xff]  ;;  %v316_v59 = vld [vmem:[#allocation10 + $0x88] sm:$0xff] }
  0x2a   :  { %567 = vmatmul.msk.f32.gmra.mxu2 %vm127_vm0, %v120_v18  ;;  %420 = vmatpush.msra.mxu3 %v357_v27  ;;  %v321_v45 = vld [vmem:[#allocation10 + $0xb0] sm:$0xff]  ;;  %v339_v50 = vld [vmem:[#allocation10 + $0x140] sm:$0xff]  ;;  %v358_v60 = vld [vmem:[#allocation10 + $0x1d8] sm:$0xff] }
  0x2b   :  { %453 = vmatpush.msrb.mxu0 %v369_v36  ;;  %397 = vmatpush.msrb.mxu2 %v325_v37  ;;  %v341_v46 = vld [vmem:[#allocation10 + $0x150] sm:$0xff]  ;;  %v315_v57 = vld [vmem:[#allocation10 + $0x80] sm:$0xff]  ;;  %v314_v63 = vld [vmem:[#allocation10 + $0x78] sm:$0xff] }
  0x2c   :  { %568 = vmatmul.msk.f32.vlgmr.msrb.gmra.mxu3 %vm203_vm1, %v105_v19  ;;  %572 = vmatmul.msk.f32.vlgmr.msrb.gmra.mxu1 %vm203_vm1, %v105_v19  ;;  %v317_v53 = vld [vmem:[#allocation10 + $0x90] sm:$0xff]  ;;  %v335_v58 = vld [vmem:[#allocation10 + $0x120] sm:$0xff]  ;;  %v356_v0 = vld [vmem:[#allocation10 + $0x1c8] sm:$0xff] }
  0x2d   :  { %571 = vmatmul.msk.f32.gmra.mxu0 %vm203_vm1, %v106_v28  ;;  %421 = vmatpush.msra.mxu3 %v355_v29  ;;  %v337_v54 = vld [vmem:[#allocation10 + $0x130] sm:$0xff]  ;;  %v311_v1 = vld [vmem:[#allocation10 + $0x60] sm:$0xff]  ;;  %v312_v3 = vld [vmem:[#allocation10 + $0x68] sm:$0xff] }
  0x2e   :  { %466 = vmatpush.msra.mxu1 %v326_v39  ;;  %454 = vmatpush.msrb.mxu0 %v367_v40  ;;  %v313_v61 = vld [vmem:[#allocation10 + $0x70] sm:$0xff]  ;;  %v331_v2 = vld [vmem:[#allocation10 + $0x100] sm:$0xff]  ;;  %v354_v4 = vld [vmem:[#allocation10 + $0x1b8] sm:$0xff] }
  0x2f   :  { %422 = vmatpush.msra.mxu3 %v353_v30  ;;  %398 = vmatpush.msrb.mxu2 %v323_v41  ;;  %v333_v62 = vld [vmem:[#allocation10 + $0x110] sm:$0xff]  ;;  %v310_v6 = vld [vmem:[#allocation10 + $0x58] sm:$0xff]  ;;  %v352_v7 = vld [vmem:[#allocation10 + $0x1a8] sm:$0xff] }
  0x30   :  { %467 = vmatpush.msra.mxu1 %v324_v43  ;;  %455 = vmatpush.msrb.mxu0 %v365_v44  ;;  %v309_v5 = vld [vmem:[#allocation10 + $0x50] sm:$0xff]  ;;  %v307_v8 = vld [vmem:[#allocation10 + $0x40] sm:$0xff]  ;;  %v308_v9 = vld [vmem:[#allocation10 + $0x48] sm:$0xff] }
  0x31   :  { %423 = vmatpush.msra.mxu3 %v351_v31  ;;  %399 = vmatpush.msrb.mxu2 %v321_v45  ;;  %v350_v10 = vld [vmem:[#allocation10 + $0x198] sm:$0xff]  ;;  %v305_v11 = vld [vmem:[#allocation10 + $0x30] sm:$0xff]  ;;  %v348_v13 = vld [vmem:[#allocation10 + $0x188] sm:$0xff] }
  0x32   :  { %468 = vmatpush.msra.mxu1 %v322_v47  ;;  %456 = vmatpush.msrb.mxu0 %v363_v48  ;;  %v306_v12 = vld [vmem:[#allocation10 + $0x38] sm:$0xff]  ;;  %v303_v14 = vld [vmem:[#allocation10 + $0x20] sm:$0xff]  ;;  %v304_v15 = vld [vmem:[#allocation10 + $0x28] sm:$0xff] }
  0x33   :  { %424 = vmatpush.msra.mxu3 %v349_v32  ;;  %400 = vmatpush.msrb.mxu2 %v319_v49  ;;  %v346_v16 = vld [vmem:[#allocation10 + $0x178] sm:$0xff]  ;;  %v301_v17 = vld [vmem:[#allocation10 + $0x10] sm:$0xff]  ;;  %v344_v19 = vld [vmem:[#allocation10 + $0x168] sm:$0xff] }
  0x34   :  { %569 = vmatmul.msk.f32.gmra.mxu3 %vm203_vm1, %v106_v28  ;;  %573 = vmatmul.msk.f32.gmra.mxu1 %vm203_vm1, %v106_v28  ;;  %v302_v18 = vld [vmem:[#allocation10 + $0x18] sm:$0xff]  ;;  %v299_v20 = vld [vmem:[#allocation10] sm:$0xff]  ;;  %v300_v21 = vld [vmem:[#allocation10 + $0x8] sm:$0xff] }
  0x35   :  { %425 = vmatpush.msra.mxu3 %v347_v34  ;;  %469 = vmatpush.msra.mxu1 %v320_v51  ;;  %v342_v22 = vld [vmem:[#allocation10 + $0x158] sm:$0xff]  ;;  %v340_v24 = vld [vmem:[#allocation10 + $0x148] sm:$0xff]  ;;  %v279_v31 = vld [vmem:[%s848_s4] sm:$0x7] }
  0x36   :  { %487 = vmatpush.msra.mxu0 %v362_v52  ;;  %401 = vmatpush.msrb.mxu2 %v317_v53  ;;  %v374_v23 = vld [vmem:[#allocation10 + $0x258] sm:$0xf]  ;;  %v372_v26 = vld [vmem:[#allocation10 + $0x248] sm:$0xff]  ;;  %v283_v45 = vperm.slane %v279_v31, 2  ;;  %v281_v53 = vperm.slane %v279_v31, 0 }
  0x37   :  { %426 = vmatpush.msra.mxu3 %v345_v38  ;;  %470 = vmatpush.msra.mxu1 %v318_v55  ;;  %v338_v25 = vld [vmem:[#allocation10 + $0x138] sm:$0xff]  ;;  %v336_v28 = vld [vmem:[#allocation10 + $0x128] sm:$0xff]  ;;  %v282_v38 = vperm.slane %v279_v31, 1 }
  0x38   :  { %488 = vmatpush.msra.mxu0 %v360_v56  ;;  %402 = vmatpush.msrb.mxu2 %v315_v57  ;;  %v370_v29 = vld [vmem:[#allocation10 + $0x238] sm:$0xff]  ;;  %v368_v32 = vld [vmem:[#allocation10 + $0x228] sm:$0xff] }
  0x39   :  { %427 = vmatpush.msra.mxu3 %v343_v42  ;;  %471 = vmatpush.msra.mxu1 %v316_v59  ;;  %v334_v30 = vld [vmem:[#allocation10 + $0x118] sm:$0xff]  ;;  %v332_v33 = vld [vmem:[#allocation10 + $0x108] sm:$0xff] }
  0x3a   :  { %489 = vmatpush.msra.mxu0 %v358_v60  ;;  %403 = vmatpush.msrb.mxu2 %v313_v61  ;;  %v366_v35 = vld [vmem:[#allocation10 + $0x218] sm:$0xff]  ;;  %v364_v36 = vld [vmem:[#allocation10 + $0x208] sm:$0xff] }
  0x3b   :  { %428 = vmatpush.msra.mxu3 %v341_v46  ;;  %472 = vmatpush.msra.mxu1 %v314_v63 }
  0x3c   :  { %490 = vmatpush.msra.mxu0 %v356_v0  ;;  %404 = vmatpush.msrb.mxu2 %v311_v1 }
  0x3d   :  { %429 = vmatpush.msra.mxu3 %v339_v50  ;;  %473 = vmatpush.msra.mxu1 %v312_v3 }
  0x3e   :  { %491 = vmatpush.msra.mxu0 %v354_v4  ;;  %405 = vmatpush.msrb.mxu2 %v309_v5  ;;  %v375_v5 = vld [vmem:[%s850_s6] sm:$0x3]  ;;  %s755_s6 = smov [#allocation11]  }
  0x3f   :  { %430 = vmatpush.msra.mxu3 %v337_v54  ;;  %474 = vmatpush.msra.mxu1 %v310_v6  ;;  %v377_v6 = vperm.slane %v375_v5, 0  ;;  %s545_s30 = sshll.u32 %s755_s6, 4  ;;  %s546_s30 = int_to_ptr.vmem [resolvable:$true] %s545_s30 }
  0x40   :  { %492 = vmatpush.msra.mxu0 %v352_v7  ;;  %406 = vmatpush.msrb.mxu2 %v307_v8 }
  0x41   :  { %431 = vmatpush.msra.mxu3 %v335_v58  ;;  %475 = vmatpush.msra.mxu1 %v308_v9 }
  0x42   :  { %493 = vmatpush.msra.mxu0 %v350_v10  ;;  %407 = vmatpush.msrb.mxu2 %v305_v11 }
  0x43   :  { %432 = vmatpush.msra.mxu3 %v333_v62  ;;  %476 = vmatpush.msra.mxu1 %v306_v12 }
  0x44   :  { %494 = vmatpush.msra.mxu0 %v348_v13  ;;  %408 = vmatpush.msrb.mxu2 %v303_v14 }
  0x45   :  { %433 = vmatpush.msra.mxu3 %v331_v2  ;;  %477 = vmatpush.msra.mxu1 %v304_v15 }
  0x46   :  { %495 = vmatpush.msra.mxu0 %v346_v16  ;;  %409 = vmatpush.msrb.mxu2 %v301_v17  ;;  %v378_v16 = vperm.slane %v375_v5, 1 }
  0x47   :  { %478 = vmatpush.msra.mxu1 %v302_v18 }
  0x48   :  { %496 = vmatpush.msra.mxu0 %v344_v19  ;;  %410 = vmatpush.msrb.mxu2 %v299_v20 }
  0x49   :  { %479 = vmatpush.msra.mxu1 %v300_v21 }
  0x4a   :  { %497 = vmatpush.msra.mxu0 %v342_v22  ;;  %577 = vmatpush.msk.msra.mxu2 %vm388_vm2, %v374_v23 }
  0x4c   :  { %498 = vmatpush.msra.mxu0 %v340_v24  ;;  %521 = vmatpush.msra.mxu2 %v372_v26 }
  0x4e   :  { %499 = vmatpush.msra.mxu0 %v338_v25  ;;  %522 = vmatpush.msra.mxu2 %v370_v29 }
  0x50   :  { %500 = vmatpush.msra.mxu0 %v336_v28  ;;  %523 = vmatpush.msra.mxu2 %v368_v32 }
  0x52   :  { %501 = vmatpush.msra.mxu0 %v334_v30  ;;  %524 = vmatpush.msra.mxu2 %v366_v35 }
  0x54   :  { %502 = vmatpush.msra.mxu0 %v332_v33  ;;  %525 = vmatpush.msra.mxu2 %v364_v36 }
  0x99   :  { %v174_v27 = vpop.f32.mrf.mxu1 }
  0x9f   :  { %v151_v34 = vpop.f32.mrf.mxu3 }
  0xa1   :  { %v177_v37 = vpop.f32.mrf.mxu1 }
  0xa2   :  { %v250_v39 = vpop.f32.mrf.mxu0 }
  0xa3   :  { %v251_v40 = vadd.f32 %v250_v39, %v174_v27 }
  0xa5   :  { %v288_v41 = vadd.f32 %v282_v38, %v251_v40  ;;  %v197_v42 = vpop.f32.mrf.mxu2 }
  0xa7   :  { %v294_v43 = vmax.f32 %v288_v41, 0.0  ;;  %v154_v44 = vpop.f32.mrf.mxu3 }
  0xa9   :  { %v273_v46 = vpop.f32.mrf.mxu1  ;;  %434 = vmatmul.f32.vlgmr.msra.gmra.mxu3 %v294_v43 }
  0xaa   :  { %v274_v47 = vadd.f32 %v273_v46, %v197_v42  ;;  %v253_v48 = vpop.f32.mrf.mxu0 }
  0xab   :  { %v254_v49 = vadd.f32 %v253_v48, %v177_v37 }
  0xac   :  { %v289_v50 = vadd.f32 %v283_v45, %v274_v47 }
  0xad   :  { %v291_v51 = vadd.f32 %v282_v38, %v254_v49  ;;  %v200_v55 = vpop.f32.mrf.mxu2 }
  0xae   :  { %v295_v52 = vmax.f32 %v289_v50, 0.0 }
  0xaf   :  { %v227_v54 = vpop.f32.mrf.mxu3  ;;  %v297_v56 = vmax.f32 %v291_v51, 0.0 }
  0xb0   :  { %v228_v57 = vadd.f32 %v227_v54, %v151_v34  ;;  %575 = vmatmul.msk.f32.vlgmr.msrb.gmra.mxu0 %vm381_vm3, %v295_v52 }
  0xb1   :  { %v276_v58 = vpop.f32.mrf.mxu1  ;;  %437 = vmatmul.f32.gmra.mxu3 %v297_v56 }
  0xb2   :  { %v287_v59 = vadd.f32 %v281_v53, %v228_v57  ;;  %v277_v60 = vadd.f32 %v276_v58, %v200_v55 }
  0xb4   :  { %v293_v61 = vmax.f32 %v287_v59, 0.0  ;;  %v292_v62 = vadd.f32 %v283_v45, %v277_v60 }
  0xb6   :  { %v298_v63 = vmax.f32 %v292_v62, 0.0  ;;  %411 = vmatmul.f32.vlgmr.msrb.gmra.mxu2 %v293_v61  ;;  %480 = vmatmul.f32.vlgmr.msra.gmra.mxu1 %v293_v61 }
  0xb7   :  { %v230_v0 = vpop.f32.mrf.mxu3 }
  0xb8   :  { %v231_v1 = vadd.f32 %v230_v0, %v154_v44  ;;  %576 = vmatmul.msk.f32.gmra.mxu0 %vm381_vm3, %v298_v63 }
  0xba   :  { %v290_v2 = vadd.f32 %v281_v53, %v231_v1 }
  0xbc   :  { %v296_v3 = vmax.f32 %v290_v2, 0.0 }
  0xbe   :  { %414 = vmatmul.f32.gmra.mxu2 %v296_v3  ;;  %483 = vmatmul.f32.gmra.mxu1 %v296_v3 }
  0xc0   :  { %503 = vmatmul.f32.vlgmr.msra.gmra.mxu0 %v294_v43 }
  0xc6   :  { %578 = vmatmul.msk.f32.vlgmr.msra.gmra.mxu2 %vm381_vm3, %v295_v52 }
  0xc8   :  { %506 = vmatmul.f32.gmra.mxu0 %v297_v56 }
  0xce   :  { %579 = vmatmul.msk.f32.gmra.mxu2 %vm381_vm3, %v298_v63 }
 0x12c   :  { %v435_v7 = vpop.f32.mrf.mxu3 }
 0x12d   :  { %v458_v4 = vpop.f32.mrf.mxu0 }
 0x133   :  { %v481_v14 = vpop.f32.mrf.mxu1 }
 0x134   :  { %v438_v18 = vpop.f32.mrf.mxu3  ;;  %v482_v21 = vadd.f32 %v481_v14, %v378_v16 }
 0x135   :  { %v461_v8 = vpop.f32.mrf.mxu0 }
 0x139   :  { %v412_v9 = vpop.f32.mrf.mxu2 }
 0x13a   :  { %v413_v10 = vadd.f32 %v412_v9, %v377_v6 }
 0x13b   :  { %v484_v27 = vpop.f32.mrf.mxu1 }
 0x13c   :  { %v436_v11 = vadd.f32 %v435_v7, %v413_v10  ;;  %v485_v30 = vadd.f32 %v484_v27, %v378_v16 }
 0x13d   :  { %v504_v19 = vpop.f32.mrf.mxu0 }
 0x13e   :  { %v459_v12 = vadd.f32 %v458_v4, %v436_v11  ;;  %v505_v23 = vadd.f32 %v504_v19, %v482_v21 }
 0x140   :  { %v533_v13 = vmax.f32 %v459_v12, 0.0 }
 0x141   :  { %v415_v15 = vpop.f32.mrf.mxu2 }
 0x142   :  { %537 = vst [vmem:[#allocation11] sm:$0xff] %v533_v13  ;;  %v416_v17 = vadd.f32 %v415_v15, %v377_v6 }
 0x144   :  { %v439_v20 = vadd.f32 %v438_v18, %v416_v17 }
 0x145   :  { %v507_v29 = vpop.f32.mrf.mxu0 }
 0x146   :  { %v462_v22 = vadd.f32 %v461_v8, %v439_v20  ;;  %v508_v31 = vadd.f32 %v507_v29, %v485_v30 }
 0x148   :  { %v535_v24 = vmax.f32 %v462_v22, 0.0 }
 0x149   :  { %v527_v25 = vpop.f32.mrf.mxu2 }
 0x14a   :  { %539 = vst [vmem:[#allocation11 + $0x10] sm:$0xff] %v535_v24  ;;  %v528_v26 = vadd.f32 %v527_v25, %v505_v23 }
 0x14c   :  { %v534_v28 = vmax.f32 %v528_v26, 0.0 }
 0x14e   :  { %538 = vst [vmem:[#allocation11 + $0x8] sm:$0xff] %v534_v28 }
 0x151   :  { %v530_v32 = vpop.f32.mrf.mxu2 }
 0x152   :  { %v531_v33 = vadd.f32 %v530_v32, %v508_v31 }
 0x154   :  { %v536_v34 = vmax.f32 %v531_v33, 0.0 }
 0x156   :  { %540 = vst [vmem:[#allocation11 + $0x18] sm:$0xff] %v536_v34 }
 0x157   :  { %553 = dma.vmem_to_hbm [thread:$0]  %s546_s30, 512, %s548_s10, [#allocation4], %s753_s27, %s753_s27, %s754_s28  }
 0x158   :  { %742 = dma.done.wait [#allocation4], 512  }
 0x159   :  { %743 = vsyncadd [#allocation4], 4294966784 }
 0x15a   :  { %558 = vsyncpa [#allocation3], 1 }
 0x15b   :  { %559 = vsyncpa [#allocation6], 1 }
 0x15c   :  { %560 = vsyncpa [#allocation9], 1 }
 0x15d   :  { %561 = vsyncpa [#allocation4], 1 }

</bundles_post_ra>
